<compile_context>
chip_gen: v6e
topology: v6e:2x2x1
jax: 0.10.0
libtpu: 0.0.40
codegen_flags: <defaults>
</compile_context>

<pallas_src>
import functools

import numpy as np
import jax
import jax.numpy as jnp
from jax.experimental import pallas as pl
from jax.experimental.pallas import tpu as pltpu


# ----------------------------------------------------------------------------
# Host-side glue: Jaccard similarities (pure Python set math, not kernel work)
# ----------------------------------------------------------------------------
def comp_jaccard_sim_weight(i1, i2):
    i1, i2 = set(i1), set(i2)
    union = i1.union(i2)
    if len(union) == 0:
        return 0.01
    return len(i1.intersection(i2)) / len(union)


def calculate_var_similarity(func_names, basic_dict):
    p_sims, n_sims = [], []
    for fn in func_names:
        if fn[0] in basic_dict:
            a_d = basic_dict[fn[0]]
            p = 0.01 if fn[1] not in basic_dict else comp_jaccard_sim_weight(a_d, basic_dict[fn[1]])
            nb = [0.01 if n not in basic_dict else comp_jaccard_sim_weight(a_d, basic_dict[n])
                  for n in fn[2]]
        else:
            p = 0.01
            nb = [0.01] * len(fn[2])
        p_sims.append(p)
        n_sims.append(nb)
    p_arr = np.asarray(p_sims, dtype=np.float32)               # [B]
    n_arr = np.asarray(n_sims, dtype=np.float32).T             # [K, B]
    return p_arr, n_arr


# ----------------------------------------------------------------------------
# Pallas kernel
# ----------------------------------------------------------------------------
def rgat_sim_kernel(comb_w_ref, comb_b_ref,        # SMEM: (4,), (1,)
                    h_t_ref,                       # VMEM f32 : [H,   (K+2)*B]
                    f_t_ref,                       # VMEM bf16: [Din, (K+2)*B]
                    w_res_ref,                     # VMEM bf16: [H,   Din]
                    extra_ref,                     # VMEM f32 : [3,   (K+1)*B]
                    out_ref,                       # VMEM f32 : [1,   (K+2)*B]
                    *, K, B):
    eps2 = 1e-20                     # (CosineSimilarity eps=1e-10)^2; normal f32
    inv_tau = 1.0 / 0.07
    KB = K * B

    # ---- fused residual: embed^T = W_res @ feature^T + h^T  (bf16 MXU, f32 acc)
    embed_t = h_t_ref[...] + jnp.dot(w_res_ref[...], f_t_ref[...],
                                     preferred_element_type=jnp.float32)   # [H, N]

    a_e = embed_t[:, :B]             # [H, B]    anchors
    p_e = embed_t[:, B:2 * B]        # [H, B]    positives
    n_e = embed_t[:, 2 * B:]         # [H, K*B]  negatives (k-major along lanes)

    # ---- cosine similarities: reduce over the sublane (H) axis ----
    sum_a2 = jnp.sum(a_e * a_e, axis=0)                        # [B]  (computed once)
    sum_p2 = jnp.sum(p_e * p_e, axis=0)                        # [B]
    dot_p = jnp.sum(a_e * p_e, axis=0)                         # [B]
    cos_p = dot_p * jax.lax.rsqrt(jnp.maximum(sum_a2 * sum_p2, eps2))

    a_tiled = jnp.concatenate([a_e] * K, axis=1)               # [H, K*B]  (hoisted)
    sum_a2_t = jnp.concatenate([sum_a2] * K, axis=0)           # [K*B]     (reused norm)
    sum_n2 = jnp.sum(n_e * n_e, axis=0)                        # [K*B]
    dot_n = jnp.sum(a_tiled * n_e, axis=0)                     # [K*B]
    cos_n = dot_n * jax.lax.rsqrt(jnp.maximum(sum_a2_t * sum_n2, eps2))

    # ---- Jaccard extras, packed [3, (K+1)*B]: first B lanes = positive side ----
    ex = extra_ref[...]
    s_p, v_p, e_p = ex[0, :B], ex[1, :B], ex[2, :B]            # [B]
    s_n, v_n, e_n = ex[0, B:], ex[1, B:], ex[2, B:]            # [K*B]

    # ---- combine_sims = Linear(4,1) as scalar-weighted sum + Tanh ----
    w0 = comb_w_ref[0]
    w1 = comb_w_ref[1]
    w2 = comb_w_ref[2]
    w3 = comb_w_ref[3]
    b = comb_b_ref[0]
    comb_p = jnp.tanh(w0 * cos_p + w1 * s_p + w2 * v_p + w3 * e_p + b)    # [B]
    comb_n = jnp.tanh(w0 * cos_n + w1 * s_n + w2 * v_n + w3 * e_n + b)    # [K*B]

    # ---- InfoNCE loss, log-space with max-shift:
    #   -mean(log(exp(lp)/sum)) == mean(log(sum_exp(l - m)) + m - lp)
    lp = comb_p * inv_tau                                      # [B]
    ln = comb_n * inv_tau                                      # [K*B]
    m = lp
    for k in range(K):                                         # static K: lane slices
        m = jnp.maximum(m, ln[k * B:(k + 1) * B])
    se = jnp.exp(lp - m)
    for k in range(K):
        se = se + jnp.exp(ln[k * B:(k + 1) * B] - m)
    loss = jnp.mean(jnp.log(se) + m - lp)

    # ---- single packed lane-major output: [comb_p | cos_n | loss(bcast)] ----
    out_ref[:, 0:B] = comb_p[None, :]
    out_ref[:, B:B + KB] = cos_n[None, :]
    out_ref[:, B + KB:] = jnp.broadcast_to(loss, (1, B)).astype(jnp.float32)


# ----------------------------------------------------------------------------
# Wrapper
# ----------------------------------------------------------------------------
def rgat_sim_forward(h_all_t, f_all_t_bf16, w_res_bf16, extra_all, extra_n,
                     comb_w, comb_b, *, K, B):
    """h_all_t/f_all_t are transposed stacked [anchor(B) | positive(B) | negatives(K*B)] columns."""
    vmem = pl.BlockSpec(memory_space=pltpu.MemorySpace.VMEM)
    smem = pl.BlockSpec(memory_space=pltpu.MemorySpace.SMEM)

    packed = pl.pallas_call(
        functools.partial(rgat_sim_kernel, K=K, B=B),
        out_shape=jax.ShapeDtypeStruct((1, (K + 2) * B), jnp.float32),
        in_specs=[smem, smem, vmem, vmem, vmem, vmem],
        out_specs=vmem,
    )(comb_w, comb_b, h_all_t, f_all_t_bf16, w_res_bf16, extra_all)

    comb_p = packed[0, :B]                                     # [B]
    cos_n = packed[0, B:(K + 1) * B].reshape(K, B)             # [K, B]
    loss = packed[0, (K + 1) * B]                              # scalar

    sim_p = comb_p.reshape(B, 1)
    # Raw [K, B, 4] sim_n concat (cos, string, var, extern). Extras never enter
    # the kernel's output path (review: drop the HBM->VMEM->HBM round-trip);
    # this consumer-side stack is tiny XLA work.
    sim_n = jnp.concatenate([cos_n[:, :, None],
                             jnp.transpose(extra_n, (1, 2, 0))], axis=2)
    return sim_p, sim_n, loss


# ----------------------------------------------------------------------------
# Pure-JAX reference (same math, used only for a correctness sanity check)
# ----------------------------------------------------------------------------
def reference_forward(h_all, f_all, w_res, extra_p, extra_n, comb_w, comb_b, *, K, B):
    f32 = jnp.float32
    fq = f_all.astype(jnp.bfloat16).astype(f32)
    wq = w_res.astype(jnp.bfloat16).astype(f32)
    embed = h_all + fq @ wq.T                                  # [(K+2)B, H]
    a_e, p_e = embed[:B], embed[B:2 * B]
    n_e = embed[2 * B:].reshape(K, B, -1)
    eps2 = 1e-20
    sum_a2 = jnp.sum(a_e * a_e, axis=1)
    sum_p2 = jnp.sum(p_e * p_e, axis=1)
    cos_p = jnp.sum(a_e * p_e, axis=1) * jax.lax.rsqrt(jnp.maximum(sum_a2 * sum_p2, eps2))
    sum_n2 = jnp.sum(n_e * n_e, axis=2)
    dot_n = jnp.sum(a_e[None] * n_e, axis=2)
    cos_n = dot_n * jax.lax.rsqrt(jnp.maximum(sum_a2[None] * sum_n2, eps2))
    w0, w1, w2, w3 = comb_w
    b = comb_b[0]
    comb_p = jnp.tanh(w0 * cos_p + w1 * extra_p[0] + w2 * extra_p[1] + w3 * extra_p[2] + b)
    comb_n = jnp.tanh(w0 * cos_n + w1 * extra_n[0] + w2 * extra_n[1] + w3 * extra_n[2] + b)
    logits = jnp.concatenate([comb_p[None], comb_n], axis=0) / 0.07
    loss = -jnp.mean(jnp.log(jnp.exp(logits[0]) / jnp.sum(jnp.exp(logits), axis=0)))
    sim_p = comb_p[:, None]
    sim_n = jnp.concatenate([cos_n[..., None], jnp.transpose(extra_n, (1, 2, 0))], axis=2)
    return sim_p, sim_n, loss


# ----------------------------------------------------------------------------
# Main
# ----------------------------------------------------------------------------
if __name__ == "__main__":
    B = 8          # batch_size (graphs per side); multiple of 8 keeps slices tile-aligned
    K = 4          # number of negative graphs
    in_dim = 32    # node feature dim
    h_dim = 16     # hidden dim (== out_dim, as implied by the residual add)

    key = jax.random.PRNGKey(0)
    keys = jax.random.split(key, 10)

    # Post-RGAT-layer node-0 embeddings ('h') and raw node features ('feature')
    a_h = jax.random.normal(keys[0], (B, h_dim), dtype=jnp.float32)
    a_f = jax.random.normal(keys[1], (B, in_dim), dtype=jnp.float32)
    p_h = jax.random.normal(keys[2], (B, h_dim), dtype=jnp.float32)
    p_f = jax.random.normal(keys[3], (B, in_dim), dtype=jnp.float32)
    n_h = jax.random.normal(keys[4], (K, B, h_dim), dtype=jnp.float32)
    n_f = jax.random.normal(keys[5], (K, B, in_dim), dtype=jnp.float32)

    # Host-side stacking + transpose so the row axis N=(K+2)*B is the lane axis.
    h_all = jnp.concatenate([a_h, p_h, n_h.reshape(K * B, h_dim)], axis=0)    # [N, H]
    f_all = jnp.concatenate([a_f, p_f, n_f.reshape(K * B, in_dim)], axis=0)   # [N, Din]
    h_all_t = h_all.T                                                         # [H, N] f32
    f_all_t_bf16 = f_all.T.astype(jnp.bfloat16)                               # [Din, N] bf16

    # res_fc: Linear(in_dim, h_dim, bias=False); PyTorch weight layout [out,in]=[H,Din]
    w_res = jax.random.normal(keys[6], (h_dim, in_dim), dtype=jnp.float32) * 0.1
    w_res_bf16 = w_res.astype(jnp.bfloat16)                                   # MXU operand only

    # combine_sims: Linear(4, 1); weight order = (cos, string, var, extern)
    comb_w = jax.random.normal(keys[7], (4,), dtype=jnp.float32) * 0.5
    comb_b = jax.random.normal(keys[8], (1,), dtype=jnp.float32) * 0.1

    # Deterministic synthetic funcNames + token dicts for Jaccard sims
    funcNames = []
    for i in range(B):
        funcNames.append((f"a_{i}", f"p_{i}", [f"n_{i}_{k}" for k in range(K)]))
    f_strings, global_vars, external_funcs = {}, {}, {}
    for i in range(B):
        f_strings[f"a_{i}"] = [f"s{j}" for j in range(i, i + 5)]
        f_strings[f"p_{i}"] = [f"s{j}" for j in range(i + 1, i + 6)]
        global_vars[f"a_{i}"] = [f"g{j}" for j in range(i, i + 4)]
        global_vars[f"p_{i}"] = [f"g{j}" for j in range(i, i + 3)]
        external_funcs[f"a_{i}"] = [f"e{j}" for j in range(i, i + 3)]
        external_funcs[f"p_{i}"] = [f"e{j}" for j in range(i + 2, i + 5)]
        for k in range(K):
            if (i + k) % 2 == 0:
                f_strings[f"n_{i}_{k}"] = [f"s{j}" for j in range(k, k + 4)]
                global_vars[f"n_{i}_{k}"] = [f"g{j}" for j in range(k, k + 2)]
                external_funcs[f"n_{i}_{k}"] = [f"e{j}" for j in range(k, k + 3)]

    s_p, s_n = calculate_var_similarity(funcNames, f_strings)
    v_p, v_n = calculate_var_similarity(funcNames, global_vars)
    e_p, e_n = calculate_var_similarity(funcNames, external_funcs)
    extra_p = jnp.asarray(np.stack([s_p, v_p, e_p], axis=0))                  # [3, B]
    extra_n = jnp.asarray(np.stack([s_n, v_n, e_n], axis=0))                  # [3, K, B]
    # Single packed extras operand: [3, (K+1)*B]  (positives first, then k-major negatives)
    extra_all = jnp.concatenate([extra_p, extra_n.reshape(3, K * B)], axis=1)

    sim_p, sim_n, loss = rgat_sim_forward(
        h_all_t, f_all_t_bf16, w_res_bf16, extra_all, extra_n, comb_w, comb_b, K=K, B=B)
    jax.block_until_ready((sim_p, sim_n, loss))

    assert sim_p.shape == (B, 1)
    assert sim_n.shape == (K, B, 4)
    assert loss.shape == ()
    assert bool(jnp.isfinite(loss))

    # Correctness sanity check against a pure-JAX reference using identical math.
    ref_p, ref_n, ref_l = reference_forward(
        h_all, f_all, w_res, extra_p, extra_n, comb_w, comb_b, K=K, B=B)
    np.testing.assert_allclose(np.asarray(sim_p), np.asarray(ref_p), rtol=1e-3, atol=1e-3)
    np.testing.assert_allclose(np.asarray(sim_n), np.asarray(ref_n), rtol=1e-3, atol=1e-3)
    np.testing.assert_allclose(float(loss), float(ref_l), rtol=1e-3, atol=1e-3)

    print("KERNEL_OK")
</pallas_src>

<mosaic_0001>
module attributes {stable_mosaic.version = 11 : i64} {
  func.func @rgat_sim_kernel(%arg0: memref<4xf32, #tpu.memory_space<smem>>, %arg1: memref<1xf32, #tpu.memory_space<smem>>, %arg2: memref<16x48xf32, #tpu.memory_space<vmem>>, %arg3: memref<32x48xbf16, #tpu.memory_space<vmem>>, %arg4: memref<16x32xbf16, #tpu.memory_space<vmem>>, %arg5: memref<3x40xf32, #tpu.memory_space<vmem>>, %arg6: memref<1x48xf32, #tpu.memory_space<vmem>>) attributes {dimension_semantics = [], scalar_prefetch = 0 : i64, scratch_operands = 0 : i64, tpu.core_type = #tpu.core_type<tc>} {
    %c0 = arith.constant 0 : index
    %c0_0 = arith.constant 0 : index
    %0 = vector.load %arg2[%c0, %c0_0] : memref<16x48xf32, #tpu.memory_space<vmem>>, vector<16x48xf32>
    %c0_1 = arith.constant 0 : index
    %c0_2 = arith.constant 0 : index
    %1 = vector.load %arg4[%c0_1, %c0_2] : memref<16x32xbf16, #tpu.memory_space<vmem>>, vector<16x32xbf16>
    %c0_3 = arith.constant 0 : index
    %c0_4 = arith.constant 0 : index
    %2 = vector.load %arg3[%c0_3, %c0_4] : memref<32x48xbf16, #tpu.memory_space<vmem>>, vector<32x48xbf16>
    %cst = arith.constant dense<0.000000e+00> : vector<16x48xf32>
    %3 = tpu.matmul %1, %2, %cst {dimension_numbers = #tpu.dot_dimension_numbers<[1], [0], [0], [1], [0, 0, 1, 1], [], []>} : vector<16x32xbf16>, vector<32x48xbf16>, vector<16x48xf32> -> vector<16x48xf32>
    %4 = arith.addf %0, %3 : vector<16x48xf32>
    %5 = vector.extract_strided_slice %4 {offsets = [0, 0], sizes = [16, 8], strides = [1, 1]} : vector<16x48xf32> to vector<16x8xf32>
    %6 = vector.extract_strided_slice %4 {offsets = [0, 8], sizes = [16, 8], strides = [1, 1]} : vector<16x48xf32> to vector<16x8xf32>
    %7 = vector.extract_strided_slice %4 {offsets = [0, 16], sizes = [16, 32], strides = [1, 1]} : vector<16x48xf32> to vector<16x32xf32>
    %8 = arith.mulf %5, %5 : vector<16x8xf32>
    %cst_5 = arith.constant dense<0.000000e+00> : vector<8xf32>
    %9 = vector.multi_reduction <add>, %8, %cst_5 [0] : vector<16x8xf32> to vector<8xf32>
    %10 = arith.mulf %6, %6 : vector<16x8xf32>
    %cst_6 = arith.constant dense<0.000000e+00> : vector<8xf32>
    %11 = vector.multi_reduction <add>, %10, %cst_6 [0] : vector<16x8xf32> to vector<8xf32>
    %12 = arith.mulf %5, %6 : vector<16x8xf32>
    %cst_7 = arith.constant dense<0.000000e+00> : vector<8xf32>
    %13 = vector.multi_reduction <add>, %12, %cst_7 [0] : vector<16x8xf32> to vector<8xf32>
    %14 = arith.mulf %9, %11 : vector<8xf32>
    %cst_8 = arith.constant 9.99999968E-21 : f32
    %15 = vector.broadcast %cst_8 : f32 to vector<8xf32>
    %16 = arith.maximumf %14, %15 : vector<8xf32>
    %17 = math.rsqrt %16 : vector<8xf32>
    %18 = arith.mulf %13, %17 : vector<8xf32>
    %19 = tpu.concatenate %5, %5, %5, %5 in 1 : vector<16x8xf32>, vector<16x8xf32>, vector<16x8xf32>, vector<16x8xf32> -> vector<16x32xf32>
    %20 = tpu.concatenate %9, %9, %9, %9 in 0 : vector<8xf32>, vector<8xf32>, vector<8xf32>, vector<8xf32> -> vector<32xf32>
    %21 = arith.mulf %7, %7 : vector<16x32xf32>
    %cst_9 = arith.constant dense<0.000000e+00> : vector<32xf32>
    %22 = vector.multi_reduction <add>, %21, %cst_9 [0] : vector<16x32xf32> to vector<32xf32>
    %23 = arith.mulf %19, %7 : vector<16x32xf32>
    %cst_10 = arith.constant dense<0.000000e+00> : vector<32xf32>
    %24 = vector.multi_reduction <add>, %23, %cst_10 [0] : vector<16x32xf32> to vector<32xf32>
    %25 = arith.mulf %20, %22 : vector<32xf32>
    %cst_11 = arith.constant 9.99999968E-21 : f32
    %26 = vector.broadcast %cst_11 : f32 to vector<32xf32>
    %27 = arith.maximumf %25, %26 : vector<32xf32>
    %28 = math.rsqrt %27 : vector<32xf32>
    %29 = arith.mulf %24, %28 : vector<32xf32>
    %c0_12 = arith.constant 0 : index
    %c0_13 = arith.constant 0 : index
    %30 = vector.load %arg5[%c0_12, %c0_13] : memref<3x40xf32, #tpu.memory_space<vmem>>, vector<3x40xf32>
    %31 = vector.extract_strided_slice %30 {offsets = [0, 0], sizes = [1, 8], strides = [1, 1]} : vector<3x40xf32> to vector<1x8xf32>
    %32 = vector.shape_cast %31 : vector<1x8xf32> to vector<8xf32>
    %33 = vector.extract_strided_slice %30 {offsets = [1, 0], sizes = [1, 8], strides = [1, 1]} : vector<3x40xf32> to vector<1x8xf32>
    %34 = vector.shape_cast %33 : vector<1x8xf32> to vector<8xf32>
    %35 = vector.extract_strided_slice %30 {offsets = [2, 0], sizes = [1, 8], strides = [1, 1]} : vector<3x40xf32> to vector<1x8xf32>
    %36 = vector.shape_cast %35 : vector<1x8xf32> to vector<8xf32>
    %37 = vector.extract_strided_slice %30 {offsets = [0, 8], sizes = [1, 32], strides = [1, 1]} : vector<3x40xf32> to vector<1x32xf32>
    %38 = vector.shape_cast %37 : vector<1x32xf32> to vector<32xf32>
    %39 = vector.extract_strided_slice %30 {offsets = [1, 8], sizes = [1, 32], strides = [1, 1]} : vector<3x40xf32> to vector<1x32xf32>
    %40 = vector.shape_cast %39 : vector<1x32xf32> to vector<32xf32>
    %41 = vector.extract_strided_slice %30 {offsets = [2, 8], sizes = [1, 32], strides = [1, 1]} : vector<3x40xf32> to vector<1x32xf32>
    %42 = vector.shape_cast %41 : vector<1x32xf32> to vector<32xf32>
    %c0_14 = arith.constant 0 : index
    %43 = memref.load %arg0[%c0_14] : memref<4xf32, #tpu.memory_space<smem>>
    %c1 = arith.constant 1 : index
    %44 = memref.load %arg0[%c1] : memref<4xf32, #tpu.memory_space<smem>>
    %c2 = arith.constant 2 : index
    %45 = memref.load %arg0[%c2] : memref<4xf32, #tpu.memory_space<smem>>
    %c3 = arith.constant 3 : index
    %46 = memref.load %arg0[%c3] : memref<4xf32, #tpu.memory_space<smem>>
    %c0_15 = arith.constant 0 : index
    %47 = memref.load %arg1[%c0_15] : memref<1xf32, #tpu.memory_space<smem>>
    %48 = vector.broadcast %43 : f32 to vector<8xf32>
    %49 = arith.mulf %48, %18 : vector<8xf32>
    %50 = vector.broadcast %44 : f32 to vector<8xf32>
    %51 = arith.mulf %50, %32 : vector<8xf32>
    %52 = arith.addf %49, %51 : vector<8xf32>
    %53 = vector.broadcast %45 : f32 to vector<8xf32>
    %54 = arith.mulf %53, %34 : vector<8xf32>
    %55 = arith.addf %52, %54 : vector<8xf32>
    %56 = vector.broadcast %46 : f32 to vector<8xf32>
    %57 = arith.mulf %56, %36 : vector<8xf32>
    %58 = arith.addf %55, %57 : vector<8xf32>
    %59 = vector.broadcast %47 : f32 to vector<8xf32>
    %60 = arith.addf %58, %59 : vector<8xf32>
    %61 = math.tanh %60 : vector<8xf32>
    %62 = vector.broadcast %43 : f32 to vector<32xf32>
    %63 = arith.mulf %62, %29 : vector<32xf32>
    %64 = vector.broadcast %44 : f32 to vector<32xf32>
    %65 = arith.mulf %64, %38 : vector<32xf32>
    %66 = arith.addf %63, %65 : vector<32xf32>
    %67 = vector.broadcast %45 : f32 to vector<32xf32>
    %68 = arith.mulf %67, %40 : vector<32xf32>
    %69 = arith.addf %66, %68 : vector<32xf32>
    %70 = vector.broadcast %46 : f32 to vector<32xf32>
    %71 = arith.mulf %70, %42 : vector<32xf32>
    %72 = arith.addf %69, %71 : vector<32xf32>
    %73 = vector.broadcast %47 : f32 to vector<32xf32>
    %74 = arith.addf %72, %73 : vector<32xf32>
    %75 = math.tanh %74 : vector<32xf32>
    %cst_16 = arith.constant 14.2857141 : f32
    %76 = vector.broadcast %cst_16 : f32 to vector<8xf32>
    %77 = arith.mulf %61, %76 : vector<8xf32>
    %cst_17 = arith.constant 14.2857141 : f32
    %78 = vector.broadcast %cst_17 : f32 to vector<32xf32>
    %79 = arith.mulf %75, %78 : vector<32xf32>
    %80 = vector.extract_strided_slice %79 {offsets = [0], sizes = [8], strides = [1]} : vector<32xf32> to vector<8xf32>
    %81 = arith.maximumf %77, %80 : vector<8xf32>
    %82 = vector.extract_strided_slice %79 {offsets = [8], sizes = [8], strides = [1]} : vector<32xf32> to vector<8xf32>
    %83 = arith.maximumf %81, %82 : vector<8xf32>
    %84 = vector.extract_strided_slice %79 {offsets = [16], sizes = [8], strides = [1]} : vector<32xf32> to vector<8xf32>
    %85 = arith.maximumf %83, %84 : vector<8xf32>
    %86 = vector.extract_strided_slice %79 {offsets = [24], sizes = [8], strides = [1]} : vector<32xf32> to vector<8xf32>
    %87 = arith.maximumf %85, %86 : vector<8xf32>
    %88 = arith.subf %77, %87 : vector<8xf32>
    %89 = math.exp %88 : vector<8xf32>
    %90 = vector.extract_strided_slice %79 {offsets = [0], sizes = [8], strides = [1]} : vector<32xf32> to vector<8xf32>
    %91 = arith.subf %90, %87 : vector<8xf32>
    %92 = math.exp %91 : vector<8xf32>
    %93 = arith.addf %89, %92 : vector<8xf32>
    %94 = vector.extract_strided_slice %79 {offsets = [8], sizes = [8], strides = [1]} : vector<32xf32> to vector<8xf32>
    %95 = arith.subf %94, %87 : vector<8xf32>
    %96 = math.exp %95 : vector<8xf32>
    %97 = arith.addf %93, %96 : vector<8xf32>
    %98 = vector.extract_strided_slice %79 {offsets = [16], sizes = [8], strides = [1]} : vector<32xf32> to vector<8xf32>
    %99 = arith.subf %98, %87 : vector<8xf32>
    %100 = math.exp %99 : vector<8xf32>
    %101 = arith.addf %97, %100 : vector<8xf32>
    %102 = vector.extract_strided_slice %79 {offsets = [24], sizes = [8], strides = [1]} : vector<32xf32> to vector<8xf32>
    %103 = arith.subf %102, %87 : vector<8xf32>
    %104 = math.exp %103 : vector<8xf32>
    %105 = arith.addf %101, %104 : vector<8xf32>
    %106 = math.log %105 : vector<8xf32>
    %107 = arith.addf %106, %87 : vector<8xf32>
    %108 = arith.subf %107, %77 : vector<8xf32>
    %109 = vector.shape_cast %108 : vector<8xf32> to vector<1x8xf32>
    %cst_18 = arith.constant dense<0.000000e+00> : vector<1xf32>
    %110 = vector.multi_reduction <add>, %109, %cst_18 [1] : vector<1x8xf32> to vector<1xf32>
    %111 = vector.shape_cast %110 : vector<1xf32> to vector<1x1xf32>
    %112 = vector.extract %111[0, 0] : f32 from vector<1x1xf32>
    %cst_19 = arith.constant 8.000000e+00 : f32
    %113 = arith.divf %112, %cst_19 : f32
    %114 = vector.shape_cast %61 : vector<8xf32> to vector<1x8xf32>
    %c0_20 = arith.constant 0 : index
    %c0_21 = arith.constant 0 : index
    %115 = vector.load %arg6[%c0_20, %c0_21] : memref<1x48xf32, #tpu.memory_space<vmem>>, vector<1x8xf32>
    tpu.vector_store %arg6[%c0_20, %c0_21], %114 {strides = array<i32>} : memref<1x48xf32, #tpu.memory_space<vmem>>, vector<1x8xf32>,
    %116 = vector.shape_cast %29 : vector<32xf32> to vector<1x32xf32>
    %c0_22 = arith.constant 0 : index
    %c8 = arith.constant 8 : index
    %117 = vector.load %arg6[%c0_22, %c8] : memref<1x48xf32, #tpu.memory_space<vmem>>, vector<1x32xf32>
    tpu.vector_store %arg6[%c0_22, %c8], %116 {strides = array<i32>} : memref<1x48xf32, #tpu.memory_space<vmem>>, vector<1x32xf32>,
    %118 = vector.broadcast %113 : f32 to vector<1x8xf32>
    %c0_23 = arith.constant 0 : index
    %c40 = arith.constant 40 : index
    %119 = vector.load %arg6[%c0_23, %c40] : memref<1x48xf32, #tpu.memory_space<vmem>>, vector<1x8xf32>
    tpu.vector_store %arg6[%c0_23, %c40], %118 {strides = array<i32>} : memref<1x48xf32, #tpu.memory_space<vmem>>, vector<1x8xf32>,
    return
  }
}

</mosaic_0001>

<bundles_post_ra>
// kernel: tpu_custom_call.1
= control target key start
LH: loop header
LB: loop body
LE: loop exit
PB: predicated region body
PF: predicated region fallthrough
CT: control target
= control target key end

     0   :  { %12 = vsyncpa [#allocation6], 0  ;;  %s780_s0 = inlined_call_operand.vmem [shape: f32[4], index: 0, kind: input, shape index: {}]   ;;  %s781_s1 = inlined_call_operand.<no memory space> [shape: f32[1], index: 1, kind: input, shape index: {}]   ;;  %s782_s2 = inlined_call_operand.hbm [shape: f32[16,48], index: 2, kind: input, shape index: {}]   ;;  %s783_s3 = inlined_call_operand.hbm [shape: bf16[32,48], index: 3, kind: input, shape index: {}]   ;;  %s784_s4 = inlined_call_operand.hbm [shape: bf16[16,32], index: 4, kind: input, shape index: {}]   ;;  %s785_s5 = inlined_call_operand.vmem [shape: f32[3,40], index: 5, kind: input, shape index: {}]   ;;  %s786_s6 = inlined_call_operand.hbm [shape: f32[1,48], index: 6, kind: output, shape index: {}]  }
   0x1   :  { %13 = vsyncpa [#allocation4], 0 }
   0x2   :  { %14 = vsyncpa [#allocation9], 0 }
   0x3   :  { %15 = vsyncpa [#allocation5], 0  ;;  %s609_s21 = smov [#allocation8]   ;;  %s22_s25 = sshll.u32 %s780_s0, 4  ;;  %s23_s25 = int_to_ptr.vmem [resolvable:$true] %s22_s25 }
   0x4   :  { %s45_s22 = sshll.u32 %s609_s21, 4  ;;  %s46_s22 = int_to_ptr.vmem [resolvable:$true] %s45_s22 }
   0x5   :  { %s517_s26 = scalar_lea.vmem %s46_s22, 256  ;;  %p522_p1 = scmp.lt.s32.totalorder %s46_s22, %s46_s22 }
   0x6   :  { %p518_p0 = scmp.ne.s32.totalorder %s46_s22, %s517_s26  ;;  %p523_p2 = scmp.lt.s32.totalorder %s517_s26, %s517_s26 }
   0x8   :  { %p524_p3 = por %p523_p2, %p522_p1 }
   0xa   :  { %p525_p4 = pnand %p524_p3, %p518_p0 }
   0xc   :  { %528 = shalt.err (!%p525_p4)
}
   0xd   :  { %s610_s27 = smov 64   ;;  %s611_s28 = smov 4  }
   0xe   :  { %51 = dma.hbm_to_vmem [thread:$0]  %s783_s3, 256, %s46_s22, [#allocation9], %s610_s27, %s610_s27, %s611_s28  }
   0xf   :  { %s529_s7 = scalar_lea.vmem %s23_s25, 16  ;;  %p534_p6 = scmp.lt.s32.totalorder %s23_s25, %s23_s25 }
  0x10   :  { %p530_p5 = scmp.ne.s32.totalorder %s23_s25, %s529_s7  ;;  %p535_p7 = scmp.lt.s32.totalorder %s529_s7, %s529_s7 }
  0x12   :  { %p536_p8 = por %p535_p7, %p534_p6 }
  0x14   :  { %p537_p9 = pnand %p536_p8, %p530_p5 }
  0x16   :  { %540 = shalt.err (!%p537_p9)
}
  0x17   :  { %s612_s0 = smov [#allocation3]   ;;  %s613_s8 = smov [#allocation7]  }
  0x18   :  { %25 = dma.vmem_to_smem %s23_s25, 16, %s612_s0, [#allocation6]  }
  0x19   :  { %s33_s9 = sshll.u32 %s613_s8, 4  ;;  %s34_s9 = int_to_ptr.vmem [resolvable:$true] %s33_s9 }
  0x1a   :  { %s549_s10 = scalar_lea.vmem %s34_s9, 256  ;;  %p554_p11 = scmp.lt.s32.totalorder %s34_s9, %s34_s9 }
  0x1b   :  { %p550_p10 = scmp.ne.s32.totalorder %s34_s9, %s549_s10  ;;  %p555_p12 = scmp.lt.s32.totalorder %s549_s10, %s549_s10 }
  0x1d   :  { %p556_p13 = por %p555_p12, %p554_p11 }
  0x1f   :  { %p557_p0 = pnand %p556_p13, %p550_p10 }
  0x21   :  { %560 = shalt.err (!%p557_p0)
}
  0x22   :  { %s614_s3 = smov 128   ;;  %s615_s11 = smov 8  }
  0x23   :  { %39 = dma.hbm_to_vmem [thread:$0]  %s782_s2, 256, %s34_s9, [#allocation4], %s614_s3, %s614_s3, %s615_s11  }
  0x24   :  { %s616_s14 = smov [#allocation10]  }
  0x25   :  { %s57_s15 = sshll.u32 %s616_s14, 4  ;;  %s58_s15 = int_to_ptr.vmem [resolvable:$true] %s57_s15 }
  0x26   :  { %s569_s16 = scalar_lea.vmem %s58_s15, 128  ;;  %p574_p2 = scmp.lt.s32.totalorder %s58_s15, %s58_s15 }
  0x27   :  { %p570_p1 = scmp.ne.s32.totalorder %s58_s15, %s569_s16  ;;  %p575_p3 = scmp.lt.s32.totalorder %s569_s16, %s569_s16 }
  0x29   :  { %p576_p4 = por %p575_p3, %p574_p2 }
  0x2b   :  { %p577_p5 = pnand %p576_p4, %p570_p1 }
  0x2d   :  { %580 = shalt.err (!%p577_p5)
}
  0x2e   :  { %63 = dma.hbm_to_vmem [thread:$0]  %s784_s4, 128, %s58_s15, [#allocation9], %s610_s27, %s610_s27, %s611_s28  }
  0x2f   :  { %601 = dma.done.wait [#allocation6], 16  }
  0x30   :  { %602 = vsyncadd [#allocation6], 4294967280 }
  0x31   :  { %603 = dma.done.wait [#allocation4], 256  }
  0x32   :  { %604 = vsyncadd [#allocation4], 4294967040 }
  0x33   :  { %605 = dma.done.wait [#allocation9], 384  }
  0x34   :  { %606 = vsyncadd [#allocation9], 4294966912 }
  0x35   :  { %78 = sfence }
  0x36   :  { %v486_v0 = vld [vmem:[#allocation8 + $0x8] sm:$0xff]   ;;  %v617_v1 = vmov 0.0   ;;  %v487_v2 = vld [vmem:[#allocation8] sm:$0xff]   ;;  %vm618_vm0 = vmmov 0   ;;  %v488_v3 = vld [vmem:[#allocation10] sm:$0xff]   ;;  %vm105_vm1 = vcmask 261120   ;;  %v231_v23 = vlaneseq }
  0x37   :  { %459 = vmatprep.subr.bf16.mxu0 %v617_v1  ;;  %463 = vmatprep.mubr.msk.bf16.mxu0 %vm618_vm0, %v617_v1  ;;  %v80_v4 = vld [vmem:[#allocation7] sm:$0xff]  ;;  %v81_v8 = vld [vmem:[#allocation7 + $0x8] sm:$0xff]  ;;  %s619_s2 = smov 24   ;;  %vm154_vm2 = vcmask 64512   ;;  %vm262_vm3 = vcmask 392320   ;;  %s620_s4 = smov 16  }
  0x38   :  { %460 = vmatpush3.bf16.msra.mxu0 %v486_v0  ;;  %v621_v21 = vmov 1966171168   ;;  %vm164_vm4 = vcmask 130112   ;;  %v232_v30 = vshrl.u32 %v231_v23, 7  ;;  %s454_s19 = sld [smem:[#allocation3 + $0x2]]  ;;  %s622_s24 = smov 112  }
  0x39   :  { %461 = vmatprep.subr.bf16.mxu0 %v617_v1  ;;  %v229_v22 = vunpack.c.l.s4 %v621_v21  ;;  %s453_s20 = sld [smem:[#allocation3 + $0x1]]  ;;  %v311_v46 = vld [vmem:[%s785_s5] sm:$0x7]  ;;  %s623_s5 = smov 120   ;;  %vm253_vm5 = vcmp.lt.s32.totalorder %v231_v23, 8  ;;  %vm256_vm6 = vcmp.lt.s32.totalorder %v231_v23, 16 }
  0x3a   :  { %s455_s21 = sld [smem:[#allocation3 + $0x3]]  ;;  %vm221_vm7 = vcmask 130048   ;;  %vm259_vm8 = vcmp.lt.s32.totalorder %v231_v23, 24  ;;  %vm224_vm9 = vcmask 195584   ;;  %vm414_vm10 = vcmask 57344   ;;  %s625_s28 = smov [#allocation11]  }
  0x3b   :  { %v230_v29 = vunpack.c.0.s8 %v229_v22  ;;  %s749_s25 = sld [smem:[#allocation3]]  ;;  %vm427_vm11 = vcmask 319552   ;;  %s438_s29 = sshll.u32 %s625_s28, 4  ;;  %vm430_vm12 = vcmask 385344   ;;  %s439_s29 = int_to_ptr.vmem [resolvable:$true] %s438_s29 }
  0x3c   :  { %462 = vmatpush3.bf16.msra.mxu0 %v487_v2  ;;  %s581_s0 = scalar_lea.vmem %s439_s29, 16  ;;  %s585_s8 = scalar_lea.vmem %s439_s29, 32 }
  0x3d   :  { %v233_v37 = vsub.s32 %v230_v29, %v232_v30  ;;  %p582_p6 = scmp.ne.s32.totalorder %s439_s29, %s581_s0  ;;  %p586_p7 = scmp.lt.s32.totalorder %s439_s29, %s439_s29 }
  0x3e   :  { %v322_v47 = vstv %s454_s19  ;;  %p587_p8 = scmp.lt.s32.totalorder %s585_s8, %s581_s0 }
  0x3f   :  { %464 = vmatmul.mubr.msk.bf16.vlgmr.msra.gmra.mxu0 %vm105_vm1, %v488_v3  ;;  %v714_v50 = vmul.f32 %v322_v47, %v311_v46  ;;  %v319_v51 = vstv %s453_s20 }
  0x40   :  { %v328_v52 = vstv %s455_s21  ;;  %v721_v55 = vmul.f32 %v319_v51, %v311_v46  ;;  %p588_p9 = por %p587_p8, %p586_p7 }
  0x41   :  { %v325_v54 = vrot.slane %v714_v50, 1  ;;  %v723_v56 = vmul.f32 %v328_v52, %v311_v46  ;;  %v317_v47 = vstv %s749_s25 }
  0x42   :  { %p589_p10 = pnand %p588_p9, %p582_p6 }
  0x43   :  { %v331_v58 = vrot.slane %v723_v56, 2 }
  0xff   :  { %v143_v5 = vpop.f32.mrf.mxu0 }
 0x100   :  { %v681_v6 = vadd.f32 %v143_v5, %v80_v4 }
 0x101   :  { %v465_v7 = vpop.f32.mrf.mxu0 }
 0x102   :  { %213 = vrot.lane.b32.xlu1 %v681_v6, %s619_s2  ;;  %201 = vrot.lane.b32.xlu0 %v681_v6, %s615_s11  ;;  %v152_v11 = vmul.f32 %v681_v6, %v681_v6 }
 0x103   :  { %v146_v9 = vpop.f32.mrf.mxu0 }
 0x104   :  { %v687_v10 = vadd.f32 %v146_v9, %v81_v8  ;;  %v155_v14 = vsel %vm154_vm2, %v152_v11, 0.0  ;;  %v263_v16 = vsel %vm262_vm3, %v152_v11, 0.0  ;;  %v165_v32 = vsel %vm164_vm4, %v152_v11, 0.0 }
 0x105   :  { %v466_v12 = vpop.f32.mrf.mxu0 }
 0x106   :  { %203 = vrot.lane.b32.xlu1 %v687_v10, %s615_s11  ;;  %207 = vrot.lane.b32.xlu0 %v681_v6, %s620_s4  ;;  %v153_v13 = vmul.f32 %v687_v10, %v687_v10 }
 0x108   :  { %v156_v15 = vsel %vm154_vm2, %v153_v13, 0.0  ;;  %v264_v17 = vsel %vm262_vm3, %v153_v13, 0.0  ;;  %v166_v27 = vsel %vm164_vm4, %v153_v13, 0.0 }
 0x109   :  { %v157_v18 = vadd.f32 %v156_v15, %v155_v14  ;;  %v265_v19 = vadd.f32 %v264_v17, %v263_v16  ;;  %v167_v35 = vadd.f32 %v166_v27, %v165_v32 }
 0x10a   :  { %209 = vrot.lane.b32.xlu1 %v687_v10, %s620_s4  ;;  %215 = vrot.lane.b32.xlu0 %v687_v10, %s619_s2 }
 0x10b   :  { %v158_v20 = vrot.slane %v157_v18, 4  ;;  %v266_v24 = vrot.slane %v265_v19, 4  ;;  %v168_v41 = vrot.slane %v167_v35, 4 }
 0x10d   :  { %v159_v25 = vadd.f32 %v158_v20, %v157_v18  ;;  %v267_v26 = vadd.f32 %v266_v24, %v265_v19  ;;  %v169_v45 = vadd.f32 %v168_v41, %v167_v35 }
 0x10f   :  { %v160_v28 = vrot.slane %v159_v25, 2  ;;  %v268_v31 = vrot.slane %v267_v26, 2  ;;  %v170_v49 = vrot.slane %v169_v45, 2 }
 0x111   :  { %v161_v33 = vadd.f32 %v160_v28, %v159_v25  ;;  %v269_v34 = vadd.f32 %v268_v31, %v267_v26  ;;  %v171_v53 = vadd.f32 %v170_v49, %v169_v45 }
 0x113   :  { %v162_v36 = vrot.slane %v161_v33, 1  ;;  %v270_v38 = vrot.slane %v269_v34, 1  ;;  %v172_v57 = vrot.slane %v171_v53, 1 }
 0x115   :  { %v704_v39 = vadd.f32 %v162_v36, %v161_v33  ;;  %v271_v40 = vadd.f32 %v270_v38, %v269_v34  ;;  %v173_v59 = vadd.f32 %v172_v57, %v171_v53 }
 0x117   :  { %v234_v42 = vrot.slane %v704_v39, %v233_v37  ;;  %v296_v44 = vrot.slane %v271_v40, %v233_v37 }
 0x119   :  { %v241_v43 = vrot.slane %v234_v42, %v233_v37  ;;  %v303_v48 = vrot.slane %v296_v44, %v233_v37 }
 0x11b   :  { %245 = vrot.lane.b32.xlu1 %v241_v43, %s620_s4  ;;  %242 = vrot.lane.b32.xlu0 %v241_v43, %s615_s11 }
 0x11f   :  { %304 = vrot.lane.b32.xlu1 %v303_v48, %s622_s24  ;;  %248 = vrot.lane.b32.xlu0 %v241_v43, %s619_s2 }
 0x123   :  { %274 = vrot.lane.b32.xlu1 %v687_v10, %s622_s24  ;;  %272 = vrot.lane.b32.xlu0 %v681_v6, %s622_s24 }
 0x127   :  { %343 = vrot.lane.b32.xlu1 %v325_v54, %s623_s5  ;;  %339 = vrot.lane.b32.xlu0 %v721_v55, %s623_s5 }
 0x12b   :  { %194 = vrot.lane.b32.xlu1 %v173_v59, %s623_s5  ;;  %347 = vrot.lane.b32.xlu0 %v331_v58, %s623_s5 }
 0x12f   :  { %178 = vrot.lane.b32.xlu1 %v687_v10, %s623_s5  ;;  %176 = vrot.lane.b32.xlu0 %v681_v6, %s623_s5 }
 0x174   :  { %v214_v60 = vpop.permute.xlu1 %213  ;;  %v202_v61 = vpop.permute.xlu0 %201 }
 0x175   :  { %v219_v5 = vsel %vm154_vm2, %v681_v6, %v202_v61 }
 0x178   :  { %v204_v62 = vpop.permute.xlu1 %203  ;;  %v208_v63 = vpop.permute.xlu0 %207 }
 0x179   :  { %v220_v7 = vsel %vm154_vm2, %v687_v10, %v204_v62  ;;  %v222_v12 = vsel %vm221_vm7, %v219_v5, %v208_v63 }
 0x17a   :  { %v225_v19 = vsel %vm224_vm9, %v222_v12, %v214_v60 }
 0x17c   :  { %v210_v0 = vpop.permute.xlu1 %209  ;;  %v216_v1 = vpop.permute.xlu0 %215 }
 0x17d   :  { %v223_v13 = vsel %vm221_vm7, %v220_v7, %v210_v0 }
 0x17e   :  { %v226_v17 = vsel %vm224_vm9, %v223_v13, %v216_v1 }
 0x18d   :  { %v246_v2 = vpop.permute.xlu1 %245  ;;  %v243_v3 = vpop.permute.xlu0 %242 }
 0x18e   :  { %v255_v4 = vsel %vm253_vm5, %v704_v39, %v243_v3 }
 0x18f   :  { %v258_v9 = vsel %vm256_vm6, %v255_v4, %v246_v2 }
 0x191   :  { %v305_v8 = vpop.permute.xlu1 %304  ;;  %v249_v11 = vpop.permute.xlu0 %248 }
 0x192   :  { %v261_v14 = vsel %vm259_vm8, %v258_v9, %v249_v11 }
 0x193   :  { %v307_v15 = vmul.f32 %v305_v8, %v261_v14 }
 0x195   :  { %v308_v16 = vmax.f32 %v307_v15, 1e-20  ;;  %v275_v18 = vpop.permute.xlu1 %274  ;;  %v273_v20 = vpop.permute.xlu0 %272 }
 0x196   :  { %v279_v21 = vmul.f32 %v275_v18, %v226_v17  ;;  %v278_v22 = vmul.f32 %v273_v20, %v225_v19 }
 0x197   :  { %489 = vrsqrt.f32 %v308_v16 }
 0x198   :  { %v281_v23 = vsel %vm105_vm1, %v279_v21, 0.0  ;;  %v280_v24 = vsel %vm105_vm1, %v278_v22, 0.0 }
 0x199   :  { %v282_v25 = vadd.f32 %v281_v23, %v280_v24  ;;  %v344_v26 = vpop.permute.xlu1 %343  ;;  %v340_v27 = vpop.permute.xlu0 %339 }
 0x19b   :  { %v283_v28 = vrot.slane %v282_v25, 4 }
 0x19d   :  { %v284_v29 = vadd.f32 %v283_v28, %v282_v25  ;;  %v195_v30 = vpop.permute.xlu1 %194  ;;  %v348_v31 = vpop.permute.xlu0 %347 }
 0x19e   :  { %v197_v32 = vmul.f32 %v195_v30, %v704_v39 }
 0x19f   :  { %v285_v33 = vrot.slane %v284_v29, 2 }
 0x1a0   :  { %v198_v35 = vmax.f32 %v197_v32, 1e-20 }
 0x1a1   :  { %v286_v34 = vadd.f32 %v285_v33, %v284_v29  ;;  %v179_v36 = vpop.permute.xlu1 %178  ;;  %v177_v37 = vpop.permute.xlu0 %176 }
 0x1a2   :  { %v183_v38 = vmul.f32 %v179_v36, %v687_v10  ;;  %v182_v40 = vmul.f32 %v177_v37, %v681_v6  ;;  %491 = vrsqrt.f32 %v198_v35  ;;  %v334_v6 = vstv %s781_s1  ;;  %s624_s1 = smov 104  }
 0x1a3   :  { %v287_v41 = vrot.slane %v286_v34, 1 }
 0x1a4   :  { %v185_v42 = vsel %vm154_vm2, %v183_v38, 0.0  ;;  %v184_v43 = vsel %vm154_vm2, %v182_v40, 0.0  ;;  %v490_v46 = vpop.eup %489 }
 0x1a5   :  { %v288_v44 = vadd.f32 %v287_v41, %v286_v34  ;;  %v186_v45 = vadd.f32 %v185_v42, %v184_v43 }
 0x1a7   :  { %v310_v39 = vmul.f32 %v490_v46, %v288_v44  ;;  %v187_v48 = vrot.slane %v186_v45, 4 }
 0x1a9   :  { %v337_v49 = vmul.f32 %v317_v47, %v310_v39  ;;  %v188_v51 = vadd.f32 %v187_v48, %v186_v45 }
 0x1ab   :  { %v342_v52 = vadd.f32 %v340_v27, %v337_v49  ;;  %v189_v53 = vrot.slane %v188_v51, 2 }
 0x1ad   :  { %v346_v57 = vadd.f32 %v344_v26, %v342_v52  ;;  %v190_v10 = vadd.f32 %v189_v53, %v188_v51 }
 0x1af   :  { %v350_v59 = vadd.f32 %v348_v31, %v346_v57  ;;  %v191_v60 = vrot.slane %v190_v10, 1  ;;  %v492_v63 = vpop.eup %491 }
 0x1b1   :  { %v351_v61 = vadd.f32 %v350_v59, %v334_v6  ;;  %v192_v62 = vadd.f32 %v191_v60, %v190_v10 }
 0x1b3   :  { %493 = vtanh.f32 %v351_v61  ;;  %v200_v0 = vmul.f32 %v492_v63, %v192_v62 }
 0x1b5   :  { %v318_v1 = vmul.f32 %v317_v47, %v200_v0 }
 0x1b7   :  { %v321_v2 = vadd.f32 %v721_v55, %v318_v1 }
 0x1b9   :  { %v327_v3 = vadd.f32 %v325_v54, %v321_v2 }
 0x1bb   :  { %v333_v4 = vadd.f32 %v331_v58, %v327_v3 }
 0x1bd   :  { %v335_v5 = vadd.f32 %v334_v6, %v333_v4 }
 0x1bf   :  { %495 = vtanh.f32 %v335_v5 }
 0x1c0   :  { %v494_v7 = vpop.eup %493 }
 0x1c1   :  { %v354_v8 = vmul.f32 14.285714, %v494_v7 }
 0x1c3   :  { %361 = vrot.lane.b32.xlu1 %v354_v8, %s622_s24  ;;  %357 = vrot.lane.b32.xlu0 %v354_v8, %s623_s5 }
 0x1c7   :  { %365 = vrot.lane.b32.xlu0 %v354_v8, %s624_s1 }
 0x1cc   :  { %v496_v9 = vpop.eup %495 }
 0x1cd   :  { %422 = vst.msk [vmem:[#allocation11] sm:$0x1] %vm414_vm10, %v496_v9  ;;  %v353_v50 = vmul.f32 14.285714, %v496_v9 }
 0x1cf   :  { %v355_v54 = vmax.f32 %v353_v50, %v354_v8 }
 0x235   :  { %v358_v55 = vpop.permute.xlu0 %357  ;;  %v362_v58 = vpop.permute.xlu1 %361 }
 0x236   :  { %v360_v56 = vmax.f32 %v355_v54, %v358_v55 }
 0x238   :  { %v364_v11 = vmax.f32 %v360_v56, %v362_v58 }
 0x239   :  { %v366_v12 = vpop.permute.xlu0 %365 }
 0x23a   :  { %v368_v13 = vmax.f32 %v364_v11, %v366_v12 }
 0x23c   :  { %388 = vrot.lane.b32.xlu0 %v368_v13, %s620_s4  ;;  %377 = vrot.lane.b32.xlu1 %v368_v13, %s615_s11  ;;  %v369_v26 = vsub.f32 %v353_v50, %v368_v13  ;;  %v372_v27 = vsub.f32 %v354_v8, %v368_v13 }
 0x23e   :  { %v370_v28 = vmul.f32 1.442695, %v369_v26  ;;  %v373_v29 = vmul.f32 1.442695, %v372_v27 }
 0x240   :  { %399 = vrot.lane.b32.xlu1 %v368_v13, %s619_s2 }
 0x2ae   :  { %v389_v14 = vpop.permute.xlu0 %388  ;;  %v378_v15 = vpop.permute.xlu1 %377 }
 0x2af   :  { %v391_v16 = vsub.f32 %v354_v8, %v389_v14  ;;  %v380_v17 = vsub.f32 %v354_v8, %v378_v15 }
 0x2b1   :  { %v392_v18 = vmul.f32 1.442695, %v391_v16  ;;  %v381_v19 = vmul.f32 1.442695, %v380_v17 }
 0x2b2   :  { %v400_v20 = vpop.permute.xlu1 %399 }
 0x2b3   :  { %497 = vpow2.f32 %v392_v18  ;;  %v402_v21 = vsub.f32 %v354_v8, %v400_v20 }
 0x2b4   :  { %499 = vpow2.f32 %v381_v19 }
 0x2b5   :  { %v403_v22 = vmul.f32 1.442695, %v402_v21 }
 0x2b7   :  { %501 = vpow2.f32 %v403_v22 }
 0x2b8   :  { %503 = vpow2.f32 %v370_v28 }
 0x2b9   :  { %505 = vpow2.f32 %v373_v29 }
 0x2c0   :  { %v498_v23 = vpop.eup %497 }
 0x2c1   :  { %v500_v24 = vpop.eup %499  ;;  %395 = vrot.lane.b32.xlu1 %v498_v23, %s622_s24 }
 0x2c2   :  { %384 = vrot.lane.b32.xlu0 %v500_v24, %s623_s5 }
 0x2c4   :  { %v502_v25 = vpop.eup %501 }
 0x2c5   :  { %v504_v30 = vpop.eup %503 }
 0x2c6   :  { %406 = vrot.lane.b32.xlu0 %v502_v25, %s624_s1  ;;  %v506_v31 = vpop.eup %505 }
 0x2c7   :  { %v375_v32 = vadd.f32 %v506_v31, %v504_v30 }
 0x2ca   :  { %424 = vrot.lane.b32.xlu0 %v310_v39, %s615_s11 }
 0x333   :  { %v396_v35 = vpop.permute.xlu1 %395 }
 0x334   :  { %v385_v33 = vpop.permute.xlu0 %384 }
 0x335   :  { %v387_v34 = vadd.f32 %v385_v33, %v375_v32 }
 0x337   :  { %v398_v36 = vadd.f32 %v396_v35, %v387_v34 }
 0x338   :  { %v407_v37 = vpop.permute.xlu0 %406 }
 0x339   :  { %v409_v38 = vadd.f32 %v407_v37, %v398_v36 }
 0x33b   :  { %507 = vlog2.f32 %v409_v38 }
 0x33c   :  { %v425_v40 = vpop.permute.xlu0 %424 }
 0x33d   :  { %428 = vst.msk [vmem:[#allocation11] sm:$0x1] %vm427_vm11, %v425_v40 }
 0x348   :  { %v508_v41 = vpop.eup %507 }
 0x349   :  { %v411_v42 = vmul.f32 0.6931472, %v508_v41 }
 0x34b   :  { %v412_v43 = vadd.f32 %v411_v42, %v368_v13 }
 0x34d   :  { %v413_v44 = vsub.f32 %v412_v43, %v353_v50 }
 0x34f   :  { %v415_v45 = vsel %vm414_vm10, %v413_v44, 0.0 }
 0x350   :  { %416 = vadd.xlane.f32.xlu1 %v415_v45 }
 0x3d9   :  { %v417_v46 = vpop.xlane.xlu1 %416 }
 0x3da   :  { %467 = vpush %v417_v46 }
 0x40b   :  { %s468_s30 = spop %467 }
 0x40c   :  { %s421_s7 = smul.f32 0.125, %s468_s30 }
 0x40e   :  { %v429_v47 = vstv %s421_s7 }
 0x40f   :  { %431 = vst.msk [vmem:[#allocation11] sm:$0x1] %vm430_vm12, %v429_v47 }
 0x410   :  { %592 = shalt.err (!%p589_p10)
}
 0x411   :  { %441 = dma.vmem_to_hbm [thread:$0]  %s439_s29, 16, %s786_s6, [#allocation5]  }
 0x412   :  { %607 = dma.done.wait [#allocation5], 16  }
 0x413   :  { %608 = vsyncadd [#allocation5], 4294967280 }
 0x414   :  { %445 = vsyncpa [#allocation4], 1 }
 0x415   :  { %446 = vsyncpa [#allocation9], 1 }
 0x416   :  { %447 = vsyncpa [#allocation5], 1 }
 0x417   :  { %448 = vsyncpa [#allocation6], 1 }

</bundles_post_ra>
